<compile_context>
chip_gen: v6e
topology: v6e:2x2x1
jax: 0.10.0
libtpu: 0.0.40
codegen_flags: <defaults>
</compile_context>

<pallas_src>
import functools

import jax
import jax.numpy as jnp
from jax.experimental import pallas as pl
from jax.experimental.pallas import tpu as pltpu


def _round_up(x, m):
    return ((x + m - 1) // m) * m


def _leaky_relu(x, slope=0.01):
    # torch.nn.LeakyReLU default negative_slope = 0.01
    return jnp.where(x > 0, x, slope * x)


def _qnet_kernel(x_ref, w1_ref, b1_ref, w2_ref, b2_ref, w3_ref, b3_ref,
                 o_ref, *, neg_output: bool):
    """One (TB, S) batch tile -> (TB, O) output tile. Hidden dims are padded
    to 128 in the (VMEM-resident) weights; S and O are left unpadded."""
    compute_dtype = w1_ref.dtype

    # Cast matmul operands in-kernel (free on the VPU); accumulation, bias add
    # and LeakyReLU stay f32.
    x = x_ref[...].astype(compute_dtype)

    # Layer 1: Linear(S -> H) + LeakyReLU
    h1 = jnp.dot(x, w1_ref[...], preferred_element_type=jnp.float32)
    h1 = _leaky_relu(h1 + b1_ref[...])

    # Layer 2: Linear(H -> 2H) + LeakyReLU
    h2 = jnp.dot(h1.astype(compute_dtype), w2_ref[...],
                 preferred_element_type=jnp.float32)
    h2 = _leaky_relu(h2 + b2_ref[...])

    # Layer 3: Linear(2H -> O). O is small (typically 1); the compact store
    # avoids any padded HBM writeback.
    y = jnp.dot(h2.astype(compute_dtype), w3_ref[...],
                preferred_element_type=jnp.float32)
    y = y + b3_ref[...]

    if neg_output:
        y = -jnp.abs(y)

    o_ref[...] = y.astype(o_ref.dtype)


def prepare_params(params, compute_dtype=jnp.float32):
    """Pad hidden feature dims to lane multiples (128) and cast the matmul
    operands ONCE, outside the per-call hot path. state_dim / out_dim stay
    unpadded (full-dim blocks are legal). Zero padding is exact: padded lanes
    carry zeros through LeakyReLU and padded w3 rows contribute nothing."""
    w1, b1 = params["w1"], params["b1"]
    w2, b2 = params["w2"], params["b2"]
    w3, b3 = params["w3"], params["b3"]
    S, H = w1.shape
    H2 = w2.shape[1]
    O = w3.shape[1]
    H_p, H2_p = _round_up(H, 128), _round_up(H2, 128)

    def pad2(a, rows, cols, dtype):
        a = jnp.asarray(a, dtype)
        return jnp.pad(a, ((0, rows - a.shape[0]), (0, cols - a.shape[1])))

    return {
        "w1": pad2(w1, S, H_p, compute_dtype),
        "b1": pad2(jnp.reshape(b1, (1, -1)), 1, H_p, jnp.float32),
        "w2": pad2(w2, H_p, H2_p, compute_dtype),
        "b2": pad2(jnp.reshape(b2, (1, -1)), 1, H2_p, jnp.float32),
        "w3": pad2(w3, H2_p, O, compute_dtype),
        "b3": pad2(jnp.reshape(b3, (1, -1)), 1, O, jnp.float32),
    }


def qnetwork_simple_forward(x, params, *, neg_output=False,
                            compute_dtype=jnp.float32, batch_tile=4096,
                            prepared=False):
    """Fused forward pass of QNetworkModelSimple.

    x: (batch, state_dim) float32
    params: raw dict (w1 (S,H), b1, w2 (H,2H), b2, w3 (2H,O), b3) or the
            output of prepare_params() with prepared=True (hoists the weight
            pad/cast out of the hot path).
    compute_dtype: dtype of the matmul operands (f32 or bf16); accumulation,
            bias and LeakyReLU are always f32. Ignored if prepared=True.
    """
    if not prepared:
        params = prepare_params(params, compute_dtype)
    w1p, b1p = params["w1"], params["b1"]
    w2p, b2p = params["w2"], params["b2"]
    w3p, b3p = params["w3"], params["b3"]

    batch, S = x.shape
    assert w1p.shape[0] == S, "state_dim mismatch between x and params"
    H_p = w1p.shape[1]
    H2_p = w2p.shape[1]
    O = w3p.shape[1]
    compute_dtype = w1p.dtype
    itemsize = jnp.dtype(compute_dtype).itemsize
    x_itemsize = jnp.dtype(x.dtype).itemsize

    # Batch tile: large enough to amortize per-step pipeline overhead, but aim
    # for >= 2 grid steps so ("parallel",) can use both v7x TensorCores.
    # bf16 tiles are 16-row aligned (sublane packing), f32 8-row aligned.
    align = 16 if jnp.dtype(compute_dtype) == jnp.dtype(jnp.bfloat16) else 8
    TB = max(align, min(batch_tile, _round_up(pl.cdiv(batch, 2), align)))
    grid = (pl.cdiv(batch, TB),)  # ragged tail: no batch padding of x

    flops = 2 * batch * (S * H_p + H_p * H2_p + H2_p * O)
    bytes_accessed = (
        batch * (S * x_itemsize + O * 4)                       # x in, y out
        + (S * H_p + H_p * H2_p + H2_p * O) * itemsize         # weights
        + (H_p + H2_p + O) * 4)                                # biases

    # Resident VMEM estimate: constant weight/bias blocks (double-buffered by
    # default), double-buffered activation tiles, f32 intermediates. Only
    # raise the scoped limit when this approaches the default budget.
    weight_bytes = ((S * H_p + H_p * H2_p + H2_p * O) * itemsize
                    + (H_p + H2_p + O) * 4)
    act_bytes = TB * (S * x_itemsize + O * 4)
    inter_bytes = TB * (H_p + H2_p) * 4
    vmem_est = 2 * (weight_bytes + act_bytes) + inter_bytes
    vmem_limit = None
    if vmem_est > 24 * 1024 * 1024:
        vmem_limit = int(min(max(int(vmem_est * 1.5), 32 * 1024 * 1024),
                             100 * 1024 * 1024))

    kernel = functools.partial(_qnet_kernel, neg_output=neg_output)

    # Activations/outputs tile over the batch grid; weights/biases map to a
    # constant block so Pallas keeps them VMEM-resident across iterations.
    act_spec = pl.BlockSpec((TB, S), lambda i: (i, 0))
    out_spec = pl.BlockSpec((TB, O), lambda i: (i, 0))
    const = lambda a: pl.BlockSpec(a.shape, lambda i: (0, 0))

    out = pl.pallas_call(
        kernel,
        out_shape=jax.ShapeDtypeStruct((batch, O), jnp.float32),
        grid=grid,
        in_specs=[act_spec, const(w1p), const(b1p), const(w2p), const(b2p),
                  const(w3p), const(b3p)],
        out_specs=out_spec,
        compiler_params=pltpu.CompilerParams(
            dimension_semantics=("parallel",),
            vmem_limit_bytes=vmem_limit),
        cost_estimate=pl.CostEstimate(
            flops=flops, transcendentals=0, bytes_accessed=bytes_accessed),
    )(x, w1p, b1p, w2p, b2p, w3p, b3p)

    return out.astype(x.dtype)


def init_params(key, state_dim, hidden_dim, out_dim=1, dtype=jnp.float32):
    """Deterministic init mimicking torch.nn.Linear default (uniform +/-1/sqrt(fan_in))."""
    ks = jax.random.split(key, 6)

    def lin(kw, kb, fan_in, fan_out):
        bound = 1.0 / jnp.sqrt(fan_in)
        w = jax.random.uniform(kw, (fan_in, fan_out), dtype, -bound, bound)
        b = jax.random.uniform(kb, (1, fan_out), dtype, -bound, bound)
        return w, b

    w1, b1 = lin(ks[0], ks[1], state_dim, hidden_dim)
    w2, b2 = lin(ks[2], ks[3], hidden_dim, hidden_dim * 2)
    w3, b3 = lin(ks[4], ks[5], hidden_dim * 2, out_dim)
    return {"w1": w1, "b1": b1, "w2": w2, "b2": b2, "w3": w3, "b3": b3}


def reference_forward(x, params, *, neg_output=False, compute_dtype=jnp.float32):
    c = lambda a: a.astype(compute_dtype).astype(jnp.float32)
    h1 = _leaky_relu(c(x) @ c(params["w1"]) + params["b1"])
    h2 = _leaky_relu(c(h1) @ c(params["w2"]) + params["b2"])
    y = c(h2) @ c(params["w3"]) + params["b3"]
    return -jnp.abs(y) if neg_output else y


if __name__ == "__main__":
    state_dim, hidden_dim, out_dim = 16, 32, 1

    key = jax.random.PRNGKey(0)
    k_x, k_p, k_x2 = jax.random.split(key, 3)
    params = init_params(k_p, state_dim, hidden_dim, out_dim)

    # Small-batch test (single grid step), both output modes, f32 (tight).
    batch = 8
    x = jax.random.normal(k_x, (batch, state_dim), jnp.float32)
    for neg_output in (False, True):
        out = jax.block_until_ready(
            qnetwork_simple_forward(x, params, neg_output=neg_output))
        ref = reference_forward(x, params, neg_output=neg_output)
        assert out.shape == (batch, out_dim)
        assert jnp.allclose(out, ref, atol=1e-5, rtol=1e-5), (
            f"mismatch (neg_output={neg_output})")

    # Larger, non-multiple batch exercising the multi-step ragged grid, with
    # params prepared once outside the hot path.
    prep = prepare_params(params)
    batch2 = 1000
    x2 = jax.random.normal(k_x2, (batch2, state_dim), jnp.float32)
    out2 = jax.block_until_ready(
        qnetwork_simple_forward(x2, prep, neg_output=True, prepared=True))
    ref2 = reference_forward(x2, params, neg_output=True)
    assert out2.shape == (batch2, out_dim)
    assert jnp.allclose(out2, ref2, atol=1e-4, rtol=1e-4), "mismatch (batched)"

    # bf16 matmul operands (v5e/v6e fast path), compared against a reference
    # using the same bf16-rounded operands.
    out_bf16 = jax.block_until_ready(
        qnetwork_simple_forward(x2, params, neg_output=False,
                                compute_dtype=jnp.bfloat16))
    ref_bf16 = reference_forward(x2, params, neg_output=False,
                                 compute_dtype=jnp.bfloat16)
    assert jnp.allclose(out_bf16, ref_bf16, atol=2e-2, rtol=2e-2), (
        "mismatch (bf16)")

    print("KERNEL_OK")
</pallas_src>

<mosaic_0001>
module attributes {stable_mosaic.version = 11 : i64} {
  func.func @_qnet_kernel(%arg0: i32, %arg1: memref<8x16xf32, #tpu.memory_space<vmem>>, %arg2: memref<16x128xf32, #tpu.memory_space<vmem>>, %arg3: memref<1x128xf32, #tpu.memory_space<vmem>>, %arg4: memref<128x128xf32, #tpu.memory_space<vmem>>, %arg5: memref<1x128xf32, #tpu.memory_space<vmem>>, %arg6: memref<128x1xf32, #tpu.memory_space<vmem>>, %arg7: memref<1x1xf32, #tpu.memory_space<vmem>>, %arg8: memref<8x1xf32, #tpu.memory_space<vmem>>) attributes {dimension_semantics = [#tpu.dimension_semantics<parallel>], iteration_bounds = array<i64: 1>, scalar_prefetch = 0 : i64, scratch_operands = 0 : i64, tpu.core_type = #tpu.core_type<tc>, window_params = [{transform_indices = @transform_0, window_bounds = array<i64: 8, 16>}, {pipeline_mode = #tpu.pipeline_mode<synchronous>, transform_indices = @transform_1, window_bounds = array<i64: 16, 128>}, {pipeline_mode = #tpu.pipeline_mode<synchronous>, transform_indices = @transform_2, window_bounds = array<i64: 1, 128>}, {pipeline_mode = #tpu.pipeline_mode<synchronous>, transform_indices = @transform_3, window_bounds = array<i64: 128, 128>}, {pipeline_mode = #tpu.pipeline_mode<synchronous>, transform_indices = @transform_4, window_bounds = array<i64: 1, 128>}, {pipeline_mode = #tpu.pipeline_mode<synchronous>, transform_indices = @transform_5, window_bounds = array<i64: 128, 1>}, {pipeline_mode = #tpu.pipeline_mode<synchronous>, transform_indices = @transform_6, window_bounds = array<i64: 1, 1>}, {transform_indices = @transform_7, window_bounds = array<i64: 8, 1>}]} {
    %c0 = arith.constant 0 : index
    %c0_0 = arith.constant 0 : index
    %0 = vector.load %arg1[%c0, %c0_0] : memref<8x16xf32, #tpu.memory_space<vmem>>, vector<8x16xf32>
    %c0_1 = arith.constant 0 : index
    %c0_2 = arith.constant 0 : index
    %1 = vector.load %arg2[%c0_1, %c0_2] : memref<16x128xf32, #tpu.memory_space<vmem>>, vector<16x128xf32>
    %cst = arith.constant dense<0.000000e+00> : vector<8x128xf32>
    %2 = tpu.matmul %0, %1, %cst {dimension_numbers = #tpu.dot_dimension_numbers<[1], [0], [0], [1], [0, 0, 1, 1], [], []>} : vector<8x16xf32>, vector<16x128xf32>, vector<8x128xf32> -> vector<8x128xf32>
    %c0_3 = arith.constant 0 : index
    %c0_4 = arith.constant 0 : index
    %3 = vector.load %arg3[%c0_3, %c0_4] : memref<1x128xf32, #tpu.memory_space<vmem>>, vector<1x128xf32>
    %4 = vector.broadcast %3 : vector<1x128xf32> to vector<8x128xf32>
    %5 = arith.addf %2, %4 : vector<8x128xf32>
    %cst_5 = arith.constant 0.000000e+00 : f32
    %6 = vector.broadcast %cst_5 : f32 to vector<8x128xf32>
    %7 = arith.cmpf ogt, %5, %6 : vector<8x128xf32>
    %cst_6 = arith.constant 0.00999999977 : f32
    %8 = vector.broadcast %cst_6 : f32 to vector<8x128xf32>
    %9 = arith.mulf %8, %5 : vector<8x128xf32>
    %10 = arith.select %7, %5, %9 : vector<8x128xi1>, vector<8x128xf32>
    %c0_7 = arith.constant 0 : index
    %c0_8 = arith.constant 0 : index
    %11 = vector.load %arg4[%c0_7, %c0_8] : memref<128x128xf32, #tpu.memory_space<vmem>>, vector<128x128xf32>
    %cst_9 = arith.constant dense<0.000000e+00> : vector<8x128xf32>
    %12 = tpu.matmul %10, %11, %cst_9 {dimension_numbers = #tpu.dot_dimension_numbers<[1], [0], [0], [1], [0, 0, 1, 1], [], []>} : vector<8x128xf32>, vector<128x128xf32>, vector<8x128xf32> -> vector<8x128xf32>
    %c0_10 = arith.constant 0 : index
    %c0_11 = arith.constant 0 : index
    %13 = vector.load %arg5[%c0_10, %c0_11] : memref<1x128xf32, #tpu.memory_space<vmem>>, vector<1x128xf32>
    %14 = vector.broadcast %13 : vector<1x128xf32> to vector<8x128xf32>
    %15 = arith.addf %12, %14 : vector<8x128xf32>
    %cst_12 = arith.constant 0.000000e+00 : f32
    %16 = vector.broadcast %cst_12 : f32 to vector<8x128xf32>
    %17 = arith.cmpf ogt, %15, %16 : vector<8x128xf32>
    %cst_13 = arith.constant 0.00999999977 : f32
    %18 = vector.broadcast %cst_13 : f32 to vector<8x128xf32>
    %19 = arith.mulf %18, %15 : vector<8x128xf32>
    %20 = arith.select %17, %15, %19 : vector<8x128xi1>, vector<8x128xf32>
    %c0_14 = arith.constant 0 : index
    %c0_15 = arith.constant 0 : index
    %21 = vector.load %arg6[%c0_14, %c0_15] : memref<128x1xf32, #tpu.memory_space<vmem>>, vector<128x1xf32>
    %cst_16 = arith.constant dense<0.000000e+00> : vector<8x1xf32>
    %22 = tpu.matmul %20, %21, %cst_16 {dimension_numbers = #tpu.dot_dimension_numbers<[1], [0], [0], [1], [0, 0, 1, 1], [], []>} : vector<8x128xf32>, vector<128x1xf32>, vector<8x1xf32> -> vector<8x1xf32>
    %c0_17 = arith.constant 0 : index
    %c0_18 = arith.constant 0 : index
    %23 = vector.load %arg7[%c0_17, %c0_18] : memref<1x1xf32, #tpu.memory_space<vmem>>, vector<1x1xf32>
    %24 = vector.broadcast %23 : vector<1x1xf32> to vector<8x1xf32>
    %25 = arith.addf %22, %24 : vector<8x1xf32>
    %c0_19 = arith.constant 0 : index
    %c0_20 = arith.constant 0 : index
    %26 = vector.load %arg8[%c0_19, %c0_20] : memref<8x1xf32, #tpu.memory_space<vmem>>, vector<8x1xf32>
    tpu.vector_store %arg8[%c0_19, %c0_20], %25 {strides = array<i32>} : memref<8x1xf32, #tpu.memory_space<vmem>>, vector<8x1xf32>,
    return
  }
  func.func @transform_0(%arg0: i32) -> (i32, i32) {
    %c0_i32 = arith.constant 0 : i32
    %c0_i32_0 = arith.constant 0 : i32
    return %arg0, %c0_i32 : i32, i32
  }
  func.func @transform_1(%arg0: i32) -> (i32, i32) {
    %c0_i32 = arith.constant 0 : i32
    %c0_i32_0 = arith.constant 0 : i32
    %c0_i32_1 = arith.constant 0 : i32
    return %c0_i32, %c0_i32_0 : i32, i32
  }
  func.func @transform_2(%arg0: i32) -> (i32, i32) {
    %c0_i32 = arith.constant 0 : i32
    %c0_i32_0 = arith.constant 0 : i32
    %c0_i32_1 = arith.constant 0 : i32
    return %c0_i32, %c0_i32_0 : i32, i32
  }
  func.func @transform_3(%arg0: i32) -> (i32, i32) {
    %c0_i32 = arith.constant 0 : i32
    %c0_i32_0 = arith.constant 0 : i32
    %c0_i32_1 = arith.constant 0 : i32
    return %c0_i32, %c0_i32_0 : i32, i32
  }
  func.func @transform_4(%arg0: i32) -> (i32, i32) {
    %c0_i32 = arith.constant 0 : i32
    %c0_i32_0 = arith.constant 0 : i32
    %c0_i32_1 = arith.constant 0 : i32
    return %c0_i32, %c0_i32_0 : i32, i32
  }
  func.func @transform_5(%arg0: i32) -> (i32, i32) {
    %c0_i32 = arith.constant 0 : i32
    %c0_i32_0 = arith.constant 0 : i32
    %c0_i32_1 = arith.constant 0 : i32
    return %c0_i32, %c0_i32_0 : i32, i32
  }
  func.func @transform_6(%arg0: i32) -> (i32, i32) {
    %c0_i32 = arith.constant 0 : i32
    %c0_i32_0 = arith.constant 0 : i32
    %c0_i32_1 = arith.constant 0 : i32
    return %c0_i32, %c0_i32_0 : i32, i32
  }
  func.func @transform_7(%arg0: i32) -> (i32, i32) {
    %c0_i32 = arith.constant 0 : i32
    %c0_i32_0 = arith.constant 0 : i32
    return %arg0, %c0_i32 : i32, i32
  }
}

</mosaic_0001>

<bundles_post_ra>
// kernel: tpu_custom_call.1
= control target key start
LH: loop header
LB: loop body
LE: loop exit
PB: predicated region body
PF: predicated region fallthrough
CT: control target
= control target key end

     0   :  { %s706_s0 = inlined_call_operand.vmem [shape: f32[8,16], index: 0, kind: input, shape index: {}]   ;;  %s707_s1 = inlined_call_operand.hbm [shape: f32[16,128], index: 1, kind: input, shape index: {}]   ;;  %s708_s2 = inlined_call_operand.hbm [shape: f32[1,128], index: 2, kind: input, shape index: {}]   ;;  %s709_s3 = inlined_call_operand.vmem [shape: f32[128,128], index: 3, kind: input, shape index: {}]   ;;  %s710_s4 = inlined_call_operand.vmem [shape: f32[1,128], index: 4, kind: input, shape index: {}]   ;;  %s711_s5 = inlined_call_operand.vmem [shape: f32[128,1], index: 5, kind: input, shape index: {}]   ;;  %s712_s6 = inlined_call_operand.<no memory space> [shape: f32[1,1], index: 6, kind: input, shape index: {}]   ;;  %s713_s7 = inlined_call_operand.vmem [shape: f32[8,1], index: 7, kind: output, shape index: {}]  }
   0x1   :  { %v12_v0 = vstv %s712_s6 }
   0x2   :  { %13 = vst [vmem:[#allocation2] sm:$0x1] %v12_v0 }
   0x3   :  { %14 = vsyncpa [#allocation4], 0 }
   0x4   :  { %15 = vsyncpa [#allocation6], 0  ;;  %s506_s26 = smov [#allocation3]  }
   0x5   :  { %s23_s27 = sshll.u32 %s506_s26, 4  ;;  %s24_s27 = int_to_ptr.vmem [resolvable:$true] %s23_s27 }
   0x6   :  { %s470_s28 = scalar_lea.vmem %s24_s27, 256  ;;  %p475_p1 = scmp.lt.s32.totalorder %s24_s27, %s24_s27 }
   0x7   :  { %p471_p0 = scmp.ne.s32.totalorder %s24_s27, %s470_s28  ;;  %p476_p2 = scmp.lt.s32.totalorder %s470_s28, %s470_s28 }
   0x9   :  { %p477_p3 = por %p476_p2, %p475_p1 }
   0xb   :  { %p478_p4 = pnand %p477_p3, %p471_p0 }
   0xd   :  { %481 = shalt.err (!%p478_p4)
}
   0xe   :  { %s507_s29 = smov 128   ;;  %s508_s30 = smov 8  }
   0xf   :  { %29 = dma.hbm_to_vmem [thread:$0]  %s707_s1, 256, %s24_s27, [#allocation4], %s507_s29, %s507_s29, %s508_s30  }
  0x10   :  { %s509_s6 = smov [#allocation5]  }
  0x11   :  { %s36_s10 = sshll.u32 %s509_s6, 4  ;;  %s37_s10 = int_to_ptr.vmem [resolvable:$true] %s36_s10 }
  0x12   :  { %s490_s11 = scalar_lea.vmem %s37_s10, 16  ;;  %s494_s12 = scalar_lea.vmem %s37_s10, 32 }
  0x13   :  { %p491_p5 = scmp.ne.s32.totalorder %s37_s10, %s490_s11  ;;  %p495_p6 = scmp.lt.s32.totalorder %s37_s10, %s37_s10 }
  0x14   :  { %p496_p7 = scmp.lt.s32.totalorder %s494_s12, %s490_s11 }
  0x16   :  { %p497_p8 = por %p496_p7, %p495_p6 }
  0x18   :  { %p498_p9 = pnand %p497_p8, %p491_p5 }
  0x1a   :  { %501 = shalt.err (!%p498_p9)
}
  0x1b   :  { %39 = dma.hbm_to_vmem [thread:$0]  %s708_s2, 16, %s37_s10, [#allocation6]  }
  0x1c   :  { %502 = dma.done.wait [#allocation4], 256  }
  0x1d   :  { %503 = vsyncadd [#allocation4], 4294967040 }
  0x1e   :  { %504 = dma.done.wait [#allocation6], 16  }
  0x1f   :  { %505 = vsyncadd [#allocation6], 4294967280  ;;  %v510_v1 = vmov 0.0   ;;  %vm511_vm0 = vmmov 0   ;;  %v56_v2 = vld [vmem:[#allocation3 + $0x8] sm:$0xff]  ;;  %v55_v3 = vld [vmem:[#allocation3] sm:$0xff] }
  0x20   :  { %379 = vmatprep.subr.mxu0 %v510_v1  ;;  %383 = vmatprep.mubr.msk.f32.mxu0 %vm511_vm0, %v510_v1  ;;  %v54_v4 = vld [vmem:[%s706_s0] sm:$0xff]  ;;  %vm64_vm1 = vcmask 130048   ;;  %v156_v5 = vld [vmem:[%s709_s3 + $0x78] sm:$0xff]  ;;  %v155_v6 = vld [vmem:[%s709_s3 + $0x70] sm:$0xff]  ;;  %vm330_vm4 = vcmask 7168  }
  0x21   :  { %386 = vmatprep.subr.mxu1 %v510_v1  ;;  %418 = vmatprep.mubr.msk.f32.mxu1 %vm511_vm0, %v510_v1  ;;  %v154_v7 = vld [vmem:[%s709_s3 + $0x68] sm:$0xff]  ;;  %v153_v8 = vld [vmem:[%s709_s3 + $0x60] sm:$0xff]  ;;  %v152_v9 = vld [vmem:[%s709_s3 + $0x58] sm:$0xff] }
  0x22   :  { %380 = vmatpush3.msra.mxu0 %v56_v2  ;;  %387 = vmatpush3.msra.mxu1 %v156_v5  ;;  %v151_v10 = vld [vmem:[%s709_s3 + $0x50] sm:$0xff]  ;;  %v150_v11 = vld [vmem:[%s709_s3 + $0x48] sm:$0xff]  ;;  %v149_v12 = vld [vmem:[%s709_s3 + $0x40] sm:$0xff] }
  0x23   :  { %381 = vmatprep.subr.mxu0 %v510_v1  ;;  %388 = vmatprep.subr.mxu1 %v510_v1  ;;  %v148_v13 = vld [vmem:[%s709_s3 + $0x38] sm:$0xff]  ;;  %v147_v14 = vld [vmem:[%s709_s3 + $0x30] sm:$0xff]  ;;  %v146_v15 = vld [vmem:[%s709_s3 + $0x28] sm:$0xff] }
  0x24   :  { %382 = vmatpush3.msra.mxu0 %v55_v3  ;;  %389 = vmatpush3.msra.mxu1 %v155_v6  ;;  %v145_v16 = vld [vmem:[%s709_s3 + $0x20] sm:$0xff]  ;;  %v144_v17 = vld [vmem:[%s709_s3 + $0x18] sm:$0xff]  ;;  %v143_v18 = vld [vmem:[%s709_s3 + $0x10] sm:$0xff] }
  0x25   :  { %384 = vmatmul.mubr.msk.f32.vlgmr.msra.gmra.mxu0 %vm64_vm1, %v54_v4  ;;  %390 = vmatprep.subr.mxu1 %v510_v1  ;;  %v142_v19 = vld [vmem:[%s709_s3 + $0x8] sm:$0xff]  ;;  %v141_v20 = vld [vmem:[%s709_s3] sm:$0xff]  ;;  %v252_v21 = vld [vmem:[%s711_s5 + $0x78] sm:$0xff] }
  0x26   :  { %421 = vmatprep.subr.mxu0 %v510_v1  ;;  %391 = vmatpush3.msra.mxu1 %v154_v7  ;;  %v251_v22 = vld [vmem:[%s711_s5 + $0x70] sm:$0xff]  ;;  %v250_v23 = vld [vmem:[%s711_s5 + $0x68] sm:$0xff]  ;;  %v249_v24 = vld [vmem:[%s711_s5 + $0x60] sm:$0xff] }
  0x27   :  { %453 = vmatprep.mubr.msk.f32.mxu0 %vm511_vm0, %v510_v1  ;;  %392 = vmatprep.subr.mxu1 %v510_v1  ;;  %v248_v25 = vld [vmem:[%s711_s5 + $0x58] sm:$0xff]  ;;  %v247_v26 = vld [vmem:[%s711_s5 + $0x50] sm:$0xff]  ;;  %v246_v27 = vld [vmem:[%s711_s5 + $0x48] sm:$0xff] }
  0x28   :  { %393 = vmatpush3.msra.mxu1 %v153_v8  ;;  %422 = vmatpush3.msra.mxu0 %v252_v21  ;;  %v245_v28 = vld [vmem:[%s711_s5 + $0x40] sm:$0xff]  ;;  %v244_v29 = vld [vmem:[%s711_s5 + $0x38] sm:$0xff]  ;;  %v243_v30 = vld [vmem:[%s711_s5 + $0x30] sm:$0xff] }
  0x29   :  { %394 = vmatprep.subr.mxu1 %v510_v1  ;;  %423 = vmatprep.subr.mxu0 %v510_v1  ;;  %v242_v31 = vld [vmem:[%s711_s5 + $0x28] sm:$0xff]  ;;  %v241_v32 = vld [vmem:[%s711_s5 + $0x20] sm:$0xff]  ;;  %v240_v33 = vld [vmem:[%s711_s5 + $0x18] sm:$0xff] }
  0x2a   :  { %395 = vmatpush3.msra.mxu1 %v152_v9  ;;  %424 = vmatpush3.msra.mxu0 %v251_v22  ;;  %v338_v34 = vld [vmem:[#allocation5] ss:$0 sm:$0xff]  ;;  %v238_v41 = vld [vmem:[%s711_s5 + $0x8] sm:$0xff]  ;;  %v237_v42 = vld [vmem:[%s711_s5] sm:$0xff] }
  0x2b   :  { %396 = vmatprep.subr.mxu1 %v510_v1  ;;  %425 = vmatprep.subr.mxu0 %v510_v1  ;;  %v239_v40 = vld [vmem:[%s711_s5 + $0x10] sm:$0xff]  ;;  %v340_v43 = vld [vmem:[%s710_s4] ss:$0 sm:$0xff] }
  0x2c   :  { %397 = vmatpush3.msra.mxu1 %v151_v10  ;;  %426 = vmatpush3.msra.mxu0 %v250_v23  ;;  %v341_v49 = vld [vmem:[#allocation2] ss:$0 sm:$0xff] }
  0x2d   :  { %398 = vmatprep.subr.mxu1 %v510_v1  ;;  %427 = vmatprep.subr.mxu0 %v510_v1 }
  0x2e   :  { %399 = vmatpush3.msra.mxu1 %v150_v11  ;;  %428 = vmatpush3.msra.mxu0 %v249_v24 }
  0x2f   :  { %400 = vmatprep.subr.mxu1 %v510_v1  ;;  %429 = vmatprep.subr.mxu0 %v510_v1 }
  0x30   :  { %401 = vmatpush3.msra.mxu1 %v149_v12  ;;  %430 = vmatpush3.msra.mxu0 %v248_v25 }
  0x31   :  { %402 = vmatprep.subr.mxu1 %v510_v1  ;;  %431 = vmatprep.subr.mxu0 %v510_v1 }
  0x32   :  { %403 = vmatpush3.msra.mxu1 %v148_v13  ;;  %432 = vmatpush3.msra.mxu0 %v247_v26 }
  0x33   :  { %404 = vmatprep.subr.mxu1 %v510_v1  ;;  %433 = vmatprep.subr.mxu0 %v510_v1 }
  0x34   :  { %405 = vmatpush3.msra.mxu1 %v147_v14  ;;  %434 = vmatpush3.msra.mxu0 %v246_v27 }
  0x35   :  { %406 = vmatprep.subr.mxu1 %v510_v1  ;;  %435 = vmatprep.subr.mxu0 %v510_v1 }
  0x36   :  { %407 = vmatpush3.msra.mxu1 %v146_v15  ;;  %436 = vmatpush3.msra.mxu0 %v245_v28 }
  0x37   :  { %408 = vmatprep.subr.mxu1 %v510_v1  ;;  %437 = vmatprep.subr.mxu0 %v510_v1 }
  0x38   :  { %409 = vmatpush3.msra.mxu1 %v145_v16  ;;  %438 = vmatpush3.msra.mxu0 %v244_v29 }
  0x39   :  { %410 = vmatprep.subr.mxu1 %v510_v1  ;;  %439 = vmatprep.subr.mxu0 %v510_v1 }
  0x3a   :  { %411 = vmatpush3.msra.mxu1 %v144_v17  ;;  %440 = vmatpush3.msra.mxu0 %v243_v30 }
  0x3b   :  { %412 = vmatprep.subr.mxu1 %v510_v1  ;;  %441 = vmatprep.subr.mxu0 %v510_v1 }
  0x3c   :  { %413 = vmatpush3.msra.mxu1 %v143_v18  ;;  %442 = vmatpush3.msra.mxu0 %v242_v31 }
  0x3d   :  { %414 = vmatprep.subr.mxu1 %v510_v1  ;;  %443 = vmatprep.subr.mxu0 %v510_v1 }
  0x3e   :  { %415 = vmatpush3.msra.mxu1 %v142_v19  ;;  %444 = vmatpush3.msra.mxu0 %v241_v32 }
  0x3f   :  { %416 = vmatprep.subr.mxu1 %v510_v1  ;;  %445 = vmatprep.subr.mxu0 %v510_v1 }
  0x40   :  { %417 = vmatpush3.msra.mxu1 %v141_v20  ;;  %446 = vmatpush3.msra.mxu0 %v240_v33 }
  0x41   :  { %447 = vmatprep.subr.mxu0 %v510_v1 }
  0x42   :  { %448 = vmatpush3.msra.mxu0 %v239_v40 }
  0x43   :  { %449 = vmatprep.subr.mxu0 %v510_v1 }
  0x44   :  { %450 = vmatpush3.msra.mxu0 %v238_v41 }
  0x45   :  { %451 = vmatprep.subr.mxu0 %v510_v1 }
  0x46   :  { %452 = vmatpush3.msra.mxu0 %v237_v42 }
  0xe5   :  { %v134_v35 = vpop.f32.mrf.mxu0 }
  0xe6   :  { %v135_v36 = vadd.f32 %v338_v34, %v134_v35 }
  0xe7   :  { %v385_v37 = vpop.f32.mrf.mxu0 }
  0xe8   :  { %v139_v38 = vmul.f32 0.01, %v135_v36  ;;  %vm138_vm2 = vcmp.gt.f32.partialorder %v135_v36, 0.0 }
  0xea   :  { %v140_v39 = vsel %vm138_vm2, %v135_v36, %v139_v38 }
  0xeb   :  { %419 = vmatmul.mubr.f32.vlgmr.msra.gmra.mxu1 %v140_v39 }
 0x1ab   :  { %v230_v44 = vpop.f32.mrf.mxu1 }
 0x1ac   :  { %v231_v45 = vadd.f32 %v340_v43, %v230_v44 }
 0x1ad   :  { %v420_v46 = vpop.f32.mrf.mxu1 }
 0x1ae   :  { %vm234_vm3 = vcmp.gt.f32.partialorder %v231_v45, 0.0  ;;  %v235_v47 = vmul.f32 0.01, %v231_v45 }
 0x1b0   :  { %v236_v48 = vsel %vm234_vm3, %v231_v45, %v235_v47 }
 0x1b1   :  { %454 = vmatmul.mubr.f32.vlgmr.msra.gmra.mxu0 %v236_v48 }
 0x271   :  { %v326_v50 = vpop.f32.mrf.mxu0 }
 0x272   :  { %v327_v51 = vadd.f32 %v341_v49, %v326_v50 }
 0x273   :  { %v455_v52 = vpop.f32.mrf.mxu0 }
 0x274   :  { %331 = vst.msk [vmem:[%s713_s7] sm:$0xff] %vm330_vm4, %v327_v51 }
 0x275   :  { %336 = vsyncpa [#allocation4], 1 }
 0x276   :  { %337 = vsyncpa [#allocation6], 1 }

</bundles_post_ra>
